<compile_context>
chip_gen: v7x
topology: tpu7x:2x2x1
jax: 0.10.0
libtpu: 0.0.40
codegen_flags: <defaults>
</compile_context>

<pallas_src>
import functools

import jax
import jax.numpy as jnp
from jax import lax
from jax.experimental import pallas as pl
from jax.experimental.pallas import tpu as pltpu

_LANES = 128
_SUBLANES = 8


def _round_up(x, m):
    return ((x + m - 1) // m) * m


def _chip_config():
    """Returns (num_splits, max_tile_rows, vmem_limit_bytes) per TPU generation."""
    try:
        kind = jax.devices()[0].device_kind.lower()
    except Exception:
        kind = ""
    if "v7" in kind or "7x" in kind:
        # 2 TensorCores/chip, 64 MiB VMEM per TC: 4 MiB blocks, split across TCs.
        return 2, 8192, 48 << 20
    if "v6" in kind:
        # Single TC, 128 MiB VMEM (32 MiB scoped default): 4 MiB blocks.
        return 1, 8192, 64 << 20
    if "v5" in kind:
        # Single TC, 16 MiB scoped default: 2 MiB blocks + modest limit bump.
        return 1, 4096, 24 << 20
    # Unknown / older chip: conservative but still large blocks.
    return 1, 4096, 32 << 20


def _mse_partial_kernel(pred_ref, true_ref, out_ref, *,
                        tile_rows, blocks_per_split, valid_rows, need_mask):
    c = pl.program_id(0)   # split axis (TensorCore shard on v7x)
    k = pl.program_id(1)   # reduction axis over row blocks

    @pl.when(k == 0)
    def _():
        out_ref[...] = jnp.zeros_like(out_ref)

    diff = true_ref[...].astype(jnp.float32) - pred_ref[...].astype(jnp.float32)
    sq = diff * diff

    def accumulate(vals):
        if tile_rows % _SUBLANES == 0:
            # Fold (tile_rows, 128) onto the resident (8, 128) accumulator:
            # sublane-split reshape is layout-free; the sum is VPU adds.
            out_ref[...] += jnp.sum(vals.reshape(-1, _SUBLANES, _LANES), axis=0)
        else:
            # Tiny-input fallback (rows not 8-aligned): perf is moot here.
            out_ref[0:1, :] += jnp.sum(vals, axis=0, keepdims=True)

    if need_mask:
        row0 = (c * blocks_per_split + k) * tile_rows
        is_edge = row0 + tile_rows > valid_rows

        # Masked path only for blocks that can actually run past the array end
        # (ragged last block / clamped duplicate block of an over-provisioned
        # split); interior blocks skip the iota/compare/select entirely.
        @pl.when(is_edge)
        def _():
            row_ids = row0 + lax.broadcasted_iota(jnp.int32, sq.shape, 0)
            # Keep this a true select (never a multiply): the out-of-range
            # region of the block may hold garbage / NaN / Inf.
            accumulate(jnp.where(row_ids < valid_rows, sq, 0.0))

        @pl.when(jnp.logical_not(is_edge))
        def _():
            accumulate(sq)
    else:
        accumulate(sq)


def mse_loss(y_pred, y_true):
    """Computes mean((y_true - y_pred)**2) with the hot reduction in Pallas."""
    assert y_pred.shape == y_true.shape
    n = int(y_pred.size)
    assert n > 0

    num_splits, max_tile_rows, vmem_limit = _chip_config()

    # Flatten; keep the original dtype in HBM (bf16 stays bf16 - the in-kernel
    # astype(float32) does the promotion on the VPU).
    pred_flat = jnp.ravel(y_pred)
    true_flat = jnp.ravel(y_true)

    # Lane padding only when numel is not a multiple of 128 (rare); zero
    # padding contributes zero to the squared-difference sum.
    n_lanes = _round_up(n, _LANES)
    if n_lanes != n:
        pred_flat = jnp.pad(pred_flat, (0, n_lanes - n))
        true_flat = jnp.pad(true_flat, (0, n_lanes - n))
    rows = n_lanes // _LANES
    pred2d = pred_flat.reshape(rows, _LANES)
    true2d = true_flat.reshape(rows, _LANES)

    # Block choice: large blocks for big inputs; for small inputs one block
    # exactly matching the array (always a legal block shape).
    tile_rows = max_tile_rows if rows >= max_tile_rows else rows
    total_blocks = pl.cdiv(rows, tile_rows)
    blocks_per_split = pl.cdiv(total_blocks, num_splits)
    max_block = total_blocks - 1
    need_mask = (num_splits * blocks_per_split * tile_rows) > rows

    if need_mask:
        def in_index(c, k):
            # Clamp so every grid step reads an in-range block; logical blocks
            # past the end are fully masked inside the kernel.
            return (jnp.minimum(c * blocks_per_split + k, max_block), 0)
    else:
        def in_index(c, k):
            return (c * blocks_per_split + k, 0)

    kernel = functools.partial(
        _mse_partial_kernel,
        tile_rows=tile_rows,
        blocks_per_split=blocks_per_split,
        valid_rows=rows,
        need_mask=need_mask,
    )

    # Advisory hint for XLA's scheduler: big HBM-bound op, ~3 flops/element.
    bytes_accessed = (n_lanes * (y_pred.dtype.itemsize + y_true.dtype.itemsize)
                      + num_splits * _SUBLANES * _LANES * 4)
    cost = pl.CostEstimate(flops=3 * n, transcendentals=0,
                           bytes_accessed=bytes_accessed)

    # Preferred configurations first, falling back to the proven baseline if
    # the current jax/libtpu rejects CORE_PARALLEL or triple buffering.
    semantics_list = []
    if num_splits > 1 and hasattr(pltpu, "CORE_PARALLEL"):
        semantics_list.append(
            (pltpu.CORE_PARALLEL, getattr(pltpu, "ARBITRARY", "arbitrary")))
    semantics_list.append(("parallel", "arbitrary"))

    pipeline_modes = []
    if hasattr(pl, "Buffered"):
        pipeline_modes.append(pl.Buffered(3))   # triple-buffer the input DMAs
    pipeline_modes.append(None)

    def build(sem, pmode):
        spec_kw = {} if pmode is None else {"pipeline_mode": pmode}
        in_specs = [
            pl.BlockSpec((tile_rows, _LANES), in_index, **spec_kw),
            pl.BlockSpec((tile_rows, _LANES), in_index, **spec_kw),
        ]
        return pl.pallas_call(
            kernel,
            out_shape=jax.ShapeDtypeStruct(
                (num_splits * _SUBLANES, _LANES), jnp.float32),
            grid_spec=pltpu.PrefetchScalarGridSpec(
                num_scalar_prefetch=0,
                grid=(num_splits, blocks_per_split),
                in_specs=in_specs,
                # Each split owns its own lane-dense (8, 128) partial block,
                # resident in VMEM across the reduction axis.
                out_specs=pl.BlockSpec((_SUBLANES, _LANES), lambda c, k: (c, 0)),
            ),
            compiler_params=pltpu.CompilerParams(
                dimension_semantics=sem,
                vmem_limit_bytes=vmem_limit,
            ),
            cost_estimate=cost,
        )

    partials = None
    last_err = None
    for sem in semantics_list:
        for pmode in pipeline_modes:
            try:
                partials = jax.block_until_ready(build(sem, pmode)(pred2d, true2d))
                break
            except Exception as e:  # noqa: BLE001 - fall back to safer config
                last_err = e
        if partials is not None:
            break
    if partials is None:
        raise last_err

    # Tiny epilogue: reduce the (num_splits*8, 128) partials and scale by 1/N.
    # 1/N is computed in Python double precision (exact for any realistic N),
    # avoiding f32 rounding of N itself for N > 2^24.
    inv_n = 1.0 / n
    return jnp.sum(partials) * inv_n


if __name__ == "__main__":
    key = jax.random.PRNGKey(0)
    k1, k2 = jax.random.split(key)
    # Small NCHW-shaped inputs, consistent with a typical prediction/target pair.
    y_pred = jax.random.normal(k1, (2, 4, 16, 16), dtype=jnp.float32)
    y_true = jax.random.normal(k2, (2, 4, 16, 16), dtype=jnp.float32)

    loss = mse_loss(y_pred, y_true)
    jax.block_until_ready(loss)

    # Sanity check against plain-JAX reference.
    ref = jnp.mean((y_true - y_pred) ** 2)
    assert jnp.allclose(loss, ref, rtol=1e-5, atol=1e-6), (loss, ref)

    print("KERNEL_OK")
</pallas_src>

<mosaic_0001>
module attributes {stable_mosaic.version = 11 : i64} {
  func.func @_mse_partial_kernel(%arg0: i32, %arg1: i32, %arg2: memref<16x128xf32, #tpu.memory_space<vmem>>, %arg3: memref<16x128xf32, #tpu.memory_space<vmem>>, %arg4: memref<8x128xf32, #tpu.memory_space<vmem>>) attributes {dimension_semantics = [#tpu.dimension_semantics<parallel>, #tpu.dimension_semantics<arbitrary>], iteration_bounds = array<i64: 1, 1>, scalar_prefetch = 0 : i64, scratch_operands = 0 : i64, tpu.core_type = #tpu.core_type<tc>, window_params = [{transform_indices = @transform_0, window_bounds = array<i64: 16, 128>}, {transform_indices = @transform_1, window_bounds = array<i64: 16, 128>}, {transform_indices = @transform_2, window_bounds = array<i64: 8, 128>}]} {
    %c0_i32 = arith.constant 0 : i32
    %0 = arith.cmpi eq, %arg1, %c0_i32 : i32
    %1 = arith.extui %0 : i1 to i32
    %c0_i32_0 = arith.constant 0 : i32
    %2 = arith.cmpi ne, %1, %c0_i32_0 : i32
    scf.if %2 {
      %cst_8 = arith.constant 0.000000e+00 : f32
      %12 = vector.broadcast %cst_8 : f32 to vector<8x128xf32>
      %c0_9 = arith.constant 0 : index
      %c0_10 = arith.constant 0 : index
      %13 = vector.load %arg4[%c0_9, %c0_10] : memref<8x128xf32, #tpu.memory_space<vmem>>, vector<8x128xf32>
      tpu.vector_store %arg4[%c0_9, %c0_10], %12 {strides = array<i32>} : memref<8x128xf32, #tpu.memory_space<vmem>>, vector<8x128xf32>,
    } else {
    }
    %c0 = arith.constant 0 : index
    %c0_1 = arith.constant 0 : index
    %3 = vector.load %arg3[%c0, %c0_1] : memref<16x128xf32, #tpu.memory_space<vmem>>, vector<16x128xf32>
    %c0_2 = arith.constant 0 : index
    %c0_3 = arith.constant 0 : index
    %4 = vector.load %arg2[%c0_2, %c0_3] : memref<16x128xf32, #tpu.memory_space<vmem>>, vector<16x128xf32>
    %5 = arith.subf %3, %4 : vector<16x128xf32>
    %6 = arith.mulf %5, %5 : vector<16x128xf32>
    %c0_4 = arith.constant 0 : index
    %c0_5 = arith.constant 0 : index
    %7 = vector.load %arg4[%c0_4, %c0_5] : memref<8x128xf32, #tpu.memory_space<vmem>>, vector<8x128xf32>
    %8 = vector.shape_cast %6 : vector<16x128xf32> to vector<2x8x128xf32>
    %cst = arith.constant dense<0.000000e+00> : vector<8x128xf32>
    %9 = vector.multi_reduction <add>, %8, %cst [0] : vector<2x8x128xf32> to vector<8x128xf32>
    %10 = arith.addf %7, %9 : vector<8x128xf32>
    %c0_6 = arith.constant 0 : index
    %c0_7 = arith.constant 0 : index
    %11 = vector.load %arg4[%c0_6, %c0_7] : memref<8x128xf32, #tpu.memory_space<vmem>>, vector<8x128xf32>
    tpu.vector_store %arg4[%c0_6, %c0_7], %10 {strides = array<i32>} : memref<8x128xf32, #tpu.memory_space<vmem>>, vector<8x128xf32>,
    return
  }
  func.func @transform_0(%arg0: i32, %arg1: i32) -> (i32, i32) {
    %c1_i32 = arith.constant 1 : i32
    %0 = arith.muli %arg0, %c1_i32 : i32
    %1 = arith.addi %0, %arg1 : i32
    %c0_i32 = arith.constant 0 : i32
    %c0_i32_0 = arith.constant 0 : i32
    return %1, %c0_i32 : i32, i32
  }
  func.func @transform_1(%arg0: i32, %arg1: i32) -> (i32, i32) {
    %c1_i32 = arith.constant 1 : i32
    %0 = arith.muli %arg0, %c1_i32 : i32
    %1 = arith.addi %0, %arg1 : i32
    %c0_i32 = arith.constant 0 : i32
    %c0_i32_0 = arith.constant 0 : i32
    return %1, %c0_i32 : i32, i32
  }
  func.func @transform_2(%arg0: i32, %arg1: i32) -> (i32, i32) {
    %c0_i32 = arith.constant 0 : i32
    %c0_i32_0 = arith.constant 0 : i32
    return %arg0, %c0_i32 : i32, i32
  }
}

</mosaic_0001>

<bundles_post_ra>
// kernel: tpu_custom_call.1
= control target key start
LH: loop header
LB: loop body
LE: loop exit
PB: predicated region body
PF: predicated region fallthrough
CT: control target
= control target key end

     0   :  { %7 = vsyncpa [#allocation3], 0  ;;  %s219_s0 = inlined_call_operand.hbm [shape: f32[16,128], index: 0, kind: input, shape index: {}]   ;;  %s220_s1 = inlined_call_operand.hbm [shape: f32[16,128], index: 1, kind: input, shape index: {}]   ;;  %s221_s2 = inlined_call_operand.hbm [shape: f32[8,128], index: 2, kind: output, shape index: {}]  }
   0x1   :  { %8 = vsyncpa [#allocation6], 0 }
   0x2   :  { %9 = vsyncpa [#allocation4], 0  ;;  %s163_s9 = smov [#allocation2]   ;;  %s91_s13 = scalar_lea.hbm %s219_s0, 256 }
   0x3   :  { %s19_s10 = sshll.u32 %s163_s9, 4  ;;  %p92_p0 = scmp.ne.s32.totalorder %s219_s0, %s91_s13  ;;  %s20_s10 = int_to_ptr.vmem [resolvable:$true] %s19_s10 }
   0x4   :  { %p95_p1 = scmp.lt.u32.totalorder %s91_s13, %s219_s0 }
   0x6   :  { %p97_p2 = pnand %p95_p1, %p92_p0 }
   0x8   :  { %100 = shalt.err (!%p97_p2)
}
   0x9   :  { %s101_s18 = scalar_lea.vmem %s20_s10, 256  ;;  %p106_p4 = scmp.lt.s32.totalorder %s20_s10, %s20_s10 }
   0xa   :  { %p102_p3 = scmp.ne.s32.totalorder %s20_s10, %s101_s18  ;;  %p107_p5 = scmp.lt.s32.totalorder %s101_s18, %s101_s18 }
   0xc   :  { %p108_p6 = por %p107_p5, %p106_p4 }
   0xe   :  { %p109_p7 = pnand %p108_p6, %p102_p3 }
  0x10   :  { %112 = shalt.err (!%p109_p7)
}
  0x11   :  { %s164_s19 = smov 128   ;;  %s165_s20 = smov 8  }
  0x12   :  { %25 = dma.hbm_to_vmem [thread:$0]  %s219_s0, 256, %s20_s10, [#allocation3], %s164_s19, %s164_s19, %s165_s20  }
  0x13   :  { %s166_s23 = smov [#allocation5]   ;;  %s113_s27 = scalar_lea.hbm %s220_s1, 256 }
  0x14   :  { %s35_s24 = sshll.u32 %s166_s23, 4  ;;  %p114_p8 = scmp.ne.s32.totalorder %s220_s1, %s113_s27  ;;  %s36_s24 = int_to_ptr.vmem [resolvable:$true] %s35_s24 }
  0x15   :  { %p117_p9 = scmp.lt.u32.totalorder %s113_s27, %s220_s1 }
  0x17   :  { %p119_p10 = pnand %p117_p9, %p114_p8 }
  0x19   :  { %122 = shalt.err (!%p119_p10)
}
  0x1a   :  { %s123_s4 = scalar_lea.vmem %s36_s24, 256  ;;  %p128_p12 = scmp.lt.s32.totalorder %s36_s24, %s36_s24 }
  0x1b   :  { %p124_p11 = scmp.ne.s32.totalorder %s36_s24, %s123_s4  ;;  %p129_p13 = scmp.lt.s32.totalorder %s123_s4, %s123_s4 }
  0x1d   :  { %p130_p0 = por %p129_p13, %p128_p12 }
  0x1f   :  { %p131_p1 = pnand %p130_p0, %p124_p11 }
  0x21   :  { %134 = shalt.err (!%p131_p1)
}
  0x22   :  { %41 = dma.hbm_to_vmem [thread:$0]  %s220_s1, 256, %s36_s24, [#allocation6], %s164_s19, %s164_s19, %s165_s20  }
  0x23   :  { %157 = dma.done.wait [#allocation3], 256  }
  0x24   :  { %158 = vsyncadd [#allocation3], 4294967040 }
  0x25   :  { %159 = dma.done.wait [#allocation6], 256  }
  0x26   :  { %160 = vsyncadd [#allocation6], 4294967040  ;;  %v57_v0 = vld [vmem:[#allocation5] sm:$0xff]  ;;  %v58_v1 = vld [vmem:[#allocation5 + $0x8] sm:$0xff]  ;;  %s167_s6 = smov [#allocation7]  }
  0x27   :  { %v59_v2 = vld [vmem:[#allocation2] sm:$0xff]  ;;  %v60_v3 = vld [vmem:[#allocation2 + $0x8] sm:$0xff]  ;;  %s75_s7 = sshll.u32 %s167_s6, 4  ;;  %s76_s7 = int_to_ptr.vmem [resolvable:$true] %s75_s7 }
  0x28   :  { %v61_v4 = vsub.f32 %v57_v0, %v59_v2  ;;  %v62_v5 = vsub.f32 %v58_v1, %v60_v3  ;;  %s135_s8 = scalar_lea.vmem %s76_s7, 128  ;;  %p140_p3 = scmp.lt.s32.totalorder %s76_s7, %s76_s7 }
  0x29   :  { %p136_p2 = scmp.ne.s32.totalorder %s76_s7, %s135_s8  ;;  %p141_p4 = scmp.lt.s32.totalorder %s135_s8, %s135_s8 }
  0x2a   :  { %v63_v6 = vmul.f32 %v61_v4, %v61_v4  ;;  %v64_v7 = vmul.f32 %v62_v5, %v62_v5 }
  0x2b   :  { %p142_p5 = por %p141_p4, %p140_p3 }
  0x2c   :  { %v66_v8 = vadd.f32 %v64_v7, %v63_v6 }
  0x2d   :  { %p143_p6 = pnand %p142_p5, %p136_p2 }
  0x2e   :  { %68 = vst [vmem:[#allocation7] sm:$0xff] %v66_v8 }
  0x2f   :  { %146 = shalt.err (!%p143_p6)
}
  0x30   :  { %s147_s10 = scalar_lea.hbm %s221_s2, 128 }
  0x31   :  { %p148_p7 = scmp.ne.s32.totalorder %s221_s2, %s147_s10  ;;  %p151_p8 = scmp.lt.u32.totalorder %s147_s10, %s221_s2 }
  0x33   :  { %p153_p9 = pnand %p151_p8, %p148_p7 }
  0x35   :  { %156 = shalt.err (!%p153_p9)
}
  0x36   :  { %78 = dma.vmem_to_hbm [thread:$0]  %s76_s7, 128, %s221_s2, [#allocation4]  }
  0x37   :  { %161 = dma.done.wait [#allocation4], 128  }
  0x38   :  { %162 = vsyncadd [#allocation4], 4294967168 }
  0x39   :  { %82 = vsyncpa [#allocation3], 1 }
  0x3a   :  { %83 = vsyncpa [#allocation6], 1 }
  0x3b   :  { %84 = vsyncpa [#allocation4], 1 }

</bundles_post_ra>
